<compile_context>
chip_gen: v5e
topology: v5e:2x2
jax: 0.10.0
libtpu: 0.0.40
codegen_flags: <defaults>
</compile_context>

<pallas_src>
import functools

import jax
import jax.numpy as jnp
from jax import lax
from jax.experimental import pallas as pl
from jax.experimental.pallas import tpu as pltpu

HIDDEN = 64
TB_MAX = 2048          # batch-tile cap (mem/overhead-bound kernel)


def _round_up(n, m):
    return ((n + m - 1) // m) * m


def dqn_kernel(x_ref, w1_ref, b1_ref, w2_ref, b2_ref, w3_ref, b3_ref, o_ref):
    # Layer 1: Linear + ReLU (f32 MXU inputs, f32 accumulate / elementwise).
    h1 = jnp.dot(x_ref[...], w1_ref[...], preferred_element_type=jnp.float32)
    h1 = jnp.maximum(h1 + b1_ref[...], 0.0)
    # Layer 2: Linear + ReLU.
    h2 = jnp.dot(h1, w2_ref[...], preferred_element_type=jnp.float32)
    h2 = jnp.maximum(h2 + b2_ref[...], 0.0)
    # Layer 3, transposed: w3t (out_pad, H) contracted with h2 (TB, H) on H
    # -> (out_pad, TB).  Batch lives on the lane axis, so the store is
    # lane-dense while HBM writeback is only out_pad (8) rows tall.
    out_t = lax.dot_general(
        w3_ref[...], h2,
        dimension_numbers=(((1,), (1,)), ((), ())),
        preferred_element_type=jnp.float32,
    )
    o_ref[...] = (out_t + b3_ref[...]).astype(o_ref.dtype)


@functools.partial(jax.jit, static_argnames=("out_dim",))
def dqn_forward(x, params, *, out_dim):
    """x: [B, input_dim] float32. params: output of prepare_params (f32)."""
    w1, b1, w2, b2, w3t, b3t = (
        params["w1"], params["b1"], params["w2"],
        params["b2"], params["w3t"], params["b3t"],
    )
    B, input_dim = x.shape
    out_pad = w3t.shape[0]
    if out_dim > out_pad:
        raise ValueError("out_dim does not match prepared params")

    # Batch tile: always a multiple of 128 (keeps all BlockSpecs layout-legal
    # for any B); no wrapper-side pad of x -- the last block is partial.
    TB = min(TB_MAX, _round_up(B, 128))
    if TB > 128 and pl.cdiv(B, TB) < 2:
        # Mid-size batches: split so the grid has >= 2 steps (v7x has 2 TCs).
        TB = max(128, _round_up(pl.cdiv(B, 2), 128))
    grid = (pl.cdiv(B, TB),)

    resident = lambda i: (0, 0)   # weights/biases: same block every grid step

    cost = pl.CostEstimate(
        flops=2 * B * (input_dim * HIDDEN + HIDDEN * HIDDEN + HIDDEN * out_pad),
        transcendentals=0,
        bytes_accessed=(
            B * input_dim * 4                                    # x read
            + (w1.size + w2.size + w3t.size) * 4                 # weights
            + (b1.size + b2.size + b3t.size) * 4                 # biases
            + out_pad * B * 4                                    # output write
        ),
    )

    out_t = pl.pallas_call(
        dqn_kernel,
        out_shape=jax.ShapeDtypeStruct((out_pad, B), jnp.float32),
        grid=grid,
        in_specs=[
            pl.BlockSpec((TB, input_dim), lambda i: (i, 0)),     # x tile (pipelined)
            pl.BlockSpec((input_dim, HIDDEN), resident),         # w1
            pl.BlockSpec((1, HIDDEN), resident),                 # b1
            pl.BlockSpec((HIDDEN, HIDDEN), resident),            # w2
            pl.BlockSpec((1, HIDDEN), resident),                 # b2
            pl.BlockSpec((out_pad, HIDDEN), resident),           # w3 transposed+padded
            pl.BlockSpec((out_pad, 1), resident),                # b3 transposed+padded
        ],
        out_specs=pl.BlockSpec((out_pad, TB), lambda i: (0, i)),
        compiler_params=pltpu.CompilerParams(
            dimension_semantics=("parallel",),
        ),
        cost_estimate=cost,
    )(x, w1, b1, w2, b2, w3t, b3t)

    # (out_pad, B) -> (B, out_dim)
    return out_t[:out_dim, :].T


def init_params(key, input_dim, output_dim, hidden=HIDDEN):
    """Deterministic synthetic init (PyTorch-style uniform fan-in bounds).

    Raw layout: w* are [in_features, out_features], biases are [1, out_features],
    everything f32 (matches the nn.Module numerics; MXU dtype is off the
    critical path for this memory-bound kernel).
    """
    ks = jax.random.split(key, 6)

    def uniform(k, shape, fan_in):
        bound = 1.0 / jnp.sqrt(jnp.float32(fan_in))
        return jax.random.uniform(k, shape, jnp.float32, -bound, bound)

    return {
        "w1": uniform(ks[0], (input_dim, hidden), input_dim),
        "b1": uniform(ks[1], (1, hidden), input_dim),
        "w2": uniform(ks[2], (hidden, hidden), hidden),
        "b2": uniform(ks[3], (1, hidden), hidden),
        "w3": uniform(ks[4], (hidden, output_dim), hidden),
        "b3": uniform(ks[5], (1, output_dim), hidden),
    }


def prepare_params(params):
    """One-time kernel-layout prep (outside the per-call path).

    Layer-3 weight is stored transposed, (out_pad8, HIDDEN) -- PyTorch's native
    [out_features, in_features] layout padded to an 8-sublane output height --
    and its bias as an (out_pad8, 1) column for the transposed output slab.
    """
    out_dim = params["w3"].shape[1]
    out_pad = _round_up(out_dim, 8)
    w3t = jnp.pad(params["w3"].T, ((0, out_pad - out_dim), (0, 0)))
    b3t = jnp.pad(params["b3"].T, ((0, out_pad - out_dim), (0, 0)))
    return {
        "w1": params["w1"], "b1": params["b1"],
        "w2": params["w2"], "b2": params["b2"],
        "w3t": w3t, "b3t": b3t,
    }


def dqn_reference(x, p):
    """Pure-JAX reference (raw params, f32 throughout)."""
    h1 = jnp.maximum(
        jnp.dot(x, p["w1"], preferred_element_type=jnp.float32) + p["b1"], 0.0)
    h2 = jnp.maximum(
        jnp.dot(h1, p["w2"], preferred_element_type=jnp.float32) + p["b2"], 0.0)
    return jnp.dot(h2, p["w3"], preferred_element_type=jnp.float32) + p["b3"]


if __name__ == "__main__":
    key = jax.random.PRNGKey(0)
    k_x, k_x2, k_p = jax.random.split(key, 3)

    input_dim = 8     # small state vector for pong
    output_dim = 4    # number of discrete actions
    raw_params = init_params(k_p, input_dim, output_dim)
    params = prepare_params(raw_params)   # one-time layout prep

    # Acting-path batch (tiny; single partial block, block larger than B).
    x_small = jax.random.normal(k_x, (8, input_dim), dtype=jnp.float32)
    out_small = jax.block_until_ready(dqn_forward(x_small, params, out_dim=output_dim))
    ref_small = dqn_reference(x_small, raw_params)
    assert out_small.shape == (8, output_dim)
    assert jnp.allclose(out_small, ref_small, atol=2e-2, rtol=2e-2)

    # Training-path style batch that is not a multiple of the tile
    # (2 grid steps, partial tail block -- exercises the no-pad path).
    x_big = jax.random.normal(k_x2, (200, input_dim), dtype=jnp.float32)
    out_big = jax.block_until_ready(dqn_forward(x_big, params, out_dim=output_dim))
    ref_big = dqn_reference(x_big, raw_params)
    assert out_big.shape == (200, output_dim)
    assert jnp.allclose(out_big, ref_big, atol=2e-2, rtol=2e-2)

    print("KERNEL_OK")
</pallas_src>

<mosaic_0001>
module attributes {stable_mosaic.version = 11 : i64} {
  func.func @dqn_kernel(%arg0: i32, %arg1: memref<128x8xf32, #tpu.memory_space<vmem>>, %arg2: memref<8x64xf32, #tpu.memory_space<vmem>>, %arg3: memref<1x64xf32, #tpu.memory_space<vmem>>, %arg4: memref<64x64xf32, #tpu.memory_space<vmem>>, %arg5: memref<1x64xf32, #tpu.memory_space<vmem>>, %arg6: memref<8x64xf32, #tpu.memory_space<vmem>>, %arg7: memref<8x1xf32, #tpu.memory_space<vmem>>, %arg8: memref<8x128xf32, #tpu.memory_space<vmem>>) attributes {dimension_semantics = [#tpu.dimension_semantics<parallel>], iteration_bounds = array<i64: 1>, scalar_prefetch = 0 : i64, scratch_operands = 0 : i64, tpu.core_type = #tpu.core_type<tc>, window_params = [{transform_indices = @transform_0, window_bounds = array<i64: 128, 8>}, {pipeline_mode = #tpu.pipeline_mode<synchronous>, transform_indices = @transform_1, window_bounds = array<i64: 8, 64>}, {pipeline_mode = #tpu.pipeline_mode<synchronous>, transform_indices = @transform_2, window_bounds = array<i64: 1, 64>}, {pipeline_mode = #tpu.pipeline_mode<synchronous>, transform_indices = @transform_3, window_bounds = array<i64: 64, 64>}, {pipeline_mode = #tpu.pipeline_mode<synchronous>, transform_indices = @transform_4, window_bounds = array<i64: 1, 64>}, {pipeline_mode = #tpu.pipeline_mode<synchronous>, transform_indices = @transform_5, window_bounds = array<i64: 8, 64>}, {pipeline_mode = #tpu.pipeline_mode<synchronous>, transform_indices = @transform_6, window_bounds = array<i64: 8, 1>}, {transform_indices = @transform_7, window_bounds = array<i64: 8, 128>}]} {
    %c0 = arith.constant 0 : index
    %c0_0 = arith.constant 0 : index
    %0 = vector.load %arg1[%c0, %c0_0] : memref<128x8xf32, #tpu.memory_space<vmem>>, vector<128x8xf32>
    %c0_1 = arith.constant 0 : index
    %c0_2 = arith.constant 0 : index
    %1 = vector.load %arg2[%c0_1, %c0_2] : memref<8x64xf32, #tpu.memory_space<vmem>>, vector<8x64xf32>
    %cst = arith.constant dense<0.000000e+00> : vector<128x64xf32>
    %2 = tpu.matmul %0, %1, %cst {dimension_numbers = #tpu.dot_dimension_numbers<[1], [0], [0], [1], [0, 0, 1, 1], [], []>} : vector<128x8xf32>, vector<8x64xf32>, vector<128x64xf32> -> vector<128x64xf32>
    %c0_3 = arith.constant 0 : index
    %c0_4 = arith.constant 0 : index
    %3 = vector.load %arg3[%c0_3, %c0_4] : memref<1x64xf32, #tpu.memory_space<vmem>>, vector<1x64xf32>
    %4 = vector.broadcast %3 : vector<1x64xf32> to vector<128x64xf32>
    %5 = arith.addf %2, %4 : vector<128x64xf32>
    %cst_5 = arith.constant 0.000000e+00 : f32
    %6 = vector.broadcast %cst_5 : f32 to vector<128x64xf32>
    %7 = arith.maximumf %5, %6 : vector<128x64xf32>
    %c0_6 = arith.constant 0 : index
    %c0_7 = arith.constant 0 : index
    %8 = vector.load %arg4[%c0_6, %c0_7] : memref<64x64xf32, #tpu.memory_space<vmem>>, vector<64x64xf32>
    %cst_8 = arith.constant dense<0.000000e+00> : vector<128x64xf32>
    %9 = tpu.matmul %7, %8, %cst_8 {dimension_numbers = #tpu.dot_dimension_numbers<[1], [0], [0], [1], [0, 0, 1, 1], [], []>} : vector<128x64xf32>, vector<64x64xf32>, vector<128x64xf32> -> vector<128x64xf32>
    %c0_9 = arith.constant 0 : index
    %c0_10 = arith.constant 0 : index
    %10 = vector.load %arg5[%c0_9, %c0_10] : memref<1x64xf32, #tpu.memory_space<vmem>>, vector<1x64xf32>
    %11 = vector.broadcast %10 : vector<1x64xf32> to vector<128x64xf32>
    %12 = arith.addf %9, %11 : vector<128x64xf32>
    %cst_11 = arith.constant 0.000000e+00 : f32
    %13 = vector.broadcast %cst_11 : f32 to vector<128x64xf32>
    %14 = arith.maximumf %12, %13 : vector<128x64xf32>
    %c0_12 = arith.constant 0 : index
    %c0_13 = arith.constant 0 : index
    %15 = vector.load %arg6[%c0_12, %c0_13] : memref<8x64xf32, #tpu.memory_space<vmem>>, vector<8x64xf32>
    %cst_14 = arith.constant dense<0.000000e+00> : vector<8x128xf32>
    %16 = tpu.matmul %15, %14, %cst_14 {dimension_numbers = #tpu.dot_dimension_numbers<[1], [1], [0], [0], [0, 0, 1, 0], [], []>} : vector<8x64xf32>, vector<128x64xf32>, vector<8x128xf32> -> vector<8x128xf32>
    %c0_15 = arith.constant 0 : index
    %c0_16 = arith.constant 0 : index
    %17 = vector.load %arg7[%c0_15, %c0_16] : memref<8x1xf32, #tpu.memory_space<vmem>>, vector<8x1xf32>
    %18 = vector.broadcast %17 : vector<8x1xf32> to vector<8x128xf32>
    %19 = arith.addf %16, %18 : vector<8x128xf32>
    %c0_17 = arith.constant 0 : index
    %c0_18 = arith.constant 0 : index
    %20 = vector.load %arg8[%c0_17, %c0_18] : memref<8x128xf32, #tpu.memory_space<vmem>>, vector<8x128xf32>
    tpu.vector_store %arg8[%c0_17, %c0_18], %19 {strides = array<i32>} : memref<8x128xf32, #tpu.memory_space<vmem>>, vector<8x128xf32>,
    return
  }
  func.func @transform_0(%arg0: i32) -> (i32, i32) {
    %c0_i32 = arith.constant 0 : i32
    %c0_i32_0 = arith.constant 0 : i32
    return %arg0, %c0_i32 : i32, i32
  }
  func.func @transform_1(%arg0: i32) -> (i32, i32) {
    %c0_i32 = arith.constant 0 : i32
    %c0_i32_0 = arith.constant 0 : i32
    %c0_i32_1 = arith.constant 0 : i32
    return %c0_i32, %c0_i32_0 : i32, i32
  }
  func.func @transform_2(%arg0: i32) -> (i32, i32) {
    %c0_i32 = arith.constant 0 : i32
    %c0_i32_0 = arith.constant 0 : i32
    %c0_i32_1 = arith.constant 0 : i32
    return %c0_i32, %c0_i32_0 : i32, i32
  }
  func.func @transform_3(%arg0: i32) -> (i32, i32) {
    %c0_i32 = arith.constant 0 : i32
    %c0_i32_0 = arith.constant 0 : i32
    %c0_i32_1 = arith.constant 0 : i32
    return %c0_i32, %c0_i32_0 : i32, i32
  }
  func.func @transform_4(%arg0: i32) -> (i32, i32) {
    %c0_i32 = arith.constant 0 : i32
    %c0_i32_0 = arith.constant 0 : i32
    %c0_i32_1 = arith.constant 0 : i32
    return %c0_i32, %c0_i32_0 : i32, i32
  }
  func.func @transform_5(%arg0: i32) -> (i32, i32) {
    %c0_i32 = arith.constant 0 : i32
    %c0_i32_0 = arith.constant 0 : i32
    %c0_i32_1 = arith.constant 0 : i32
    return %c0_i32, %c0_i32_0 : i32, i32
  }
  func.func @transform_6(%arg0: i32) -> (i32, i32) {
    %c0_i32 = arith.constant 0 : i32
    %c0_i32_0 = arith.constant 0 : i32
    %c0_i32_1 = arith.constant 0 : i32
    return %c0_i32, %c0_i32_0 : i32, i32
  }
  func.func @transform_7(%arg0: i32) -> (i32, i32) {
    %c0_i32 = arith.constant 0 : i32
    %c0_i32_0 = arith.constant 0 : i32
    return %c0_i32, %arg0 : i32, i32
  }
}

</mosaic_0001>

<bundles_post_ra>
// kernel: dqn_forward.1
= control target key start
LH: loop header
LB: loop body
LE: loop exit
PB: predicated region body
PF: predicated region fallthrough
CT: control target
= control target key end

     0   :  { %12 = vsyncpa [#allocation3], 0  ;;  %s775_s0 = inlined_call_operand.vmem [shape: f32[8,8], index: 0, kind: input, shape index: {}]   ;;  %s776_s1 = inlined_call_operand.hbm [shape: f32[8,64], index: 1, kind: input, shape index: {}]   ;;  %s777_s2 = inlined_call_operand.vmem [shape: f32[1,64], index: 2, kind: input, shape index: {}]   ;;  %s778_s3 = inlined_call_operand.hbm [shape: f32[64,64], index: 3, kind: input, shape index: {}]   ;;  %s779_s4 = inlined_call_operand.vmem [shape: f32[1,64], index: 4, kind: input, shape index: {}]   ;;  %s780_s5 = inlined_call_operand.hbm [shape: f32[8,64], index: 5, kind: input, shape index: {}]   ;;  %s781_s6 = inlined_call_operand.vmem [shape: f32[8,1], index: 6, kind: input, shape index: {}]   ;;  %s782_s7 = inlined_call_operand.vmem [shape: f32[8,8], index: 7, kind: output, shape index: {}]  }
   0x1   :  { %13 = vsyncpa [#allocation5], 0  ;;  %s33_s26 = sshll.u32 %s778_s3, 4  ;;  %s590_s27 = smov [#allocation4]   ;;  %s34_s26 = int_to_ptr.hbm [resolvable:$true] %s33_s26 }
   0x2   :  { %s35_s28 = sshll.u32 %s590_s27, 4  ;;  %s21_s8 = sshll.u32 %s776_s1, 4  ;;  %s36_s28 = int_to_ptr.vmem [resolvable:$true] %s35_s28  ;;  %s22_s8 = int_to_ptr.hbm [resolvable:$true] %s21_s8 }
   0x3   :  { %s591_s9 = smov 128   ;;  %s592_s10 = smov 8  }
   0x4   :  { %41 = dma.hbm_to_vmem [thread:$0]  %s34_s26, 1024, %s36_s28, [#allocation5], %s591_s9, %s591_s9, %s592_s10  }
   0x5   :  { %s593_s11 = smov [#allocation2]   ;;  %s49_s15 = sshll.u32 %s780_s5, 4  ;;  %s50_s15 = int_to_ptr.hbm [resolvable:$true] %s49_s15 }
   0x6   :  { %s23_s12 = sshll.u32 %s593_s11, 4  ;;  %s594_s3 = smov [#allocation6]   ;;  %s24_s12 = int_to_ptr.vmem [resolvable:$true] %s23_s12 }
   0x7   :  { %26 = dma.hbm_to_vmem [thread:$0]  %s22_s8, 128, %s24_s12, [#allocation3]  }
   0x8   :  { %s51_s16 = sshll.u32 %s594_s3, 4  ;;  %s52_s16 = int_to_ptr.vmem [resolvable:$true] %s51_s16 }
   0x9   :  { %54 = dma.hbm_to_vmem [thread:$0]  %s50_s15, 128, %s52_s16, [#allocation5]  }
   0xa   :  { %586 = dma.done.wait [#allocation3], 128  }
   0xb   :  { %587 = vsyncadd [#allocation3], 4294967168 }
   0xc   :  { %588 = dma.done.wait [#allocation5], 1152  }
   0xd   :  { %589 = vsyncadd [#allocation5], 4294966144  ;;  %vm90_vm0 = vcmask 64512   ;;  %v85_v0 = vld [vmem:[#allocation2] sm:$0xff]  ;;  %v70_v2 = vld [vmem:[%s775_s0 + $0x8] sm:$0xff]  ;;  %vm232_vm1 = vcmask 523264  }
   0xe   :  { %v69_v1 = vld [vmem:[%s775_s0] sm:$0xff]  ;;  %154 = vmatpush.msra.mxu0 %v85_v0  ;;  %496 = vmatpush.msra.mxu3 %v85_v0  ;;  %v71_v3 = vld [vmem:[%s775_s0 + $0x10] sm:$0xff]  ;;  %v72_v4 = vld [vmem:[%s775_s0 + $0x18] sm:$0xff] }
   0xf   :  { %447 = vmatmul.msk.f32.vlgmr.msra.gmra.mxu0 %vm90_vm0, %v69_v1  ;;  %v73_v5 = vld [vmem:[%s775_s0 + $0x20] sm:$0xff]  ;;  %v74_v6 = vld [vmem:[%s775_s0 + $0x28] sm:$0xff]  ;;  %v75_v7 = vld [vmem:[%s775_s0 + $0x30] sm:$0xff] }
  0x10   :  { %v80_v8 = vld [vmem:[%s775_s0 + $0x58] sm:$0xff]  ;;  %v227_v9 = vld [vmem:[#allocation4 + $0x38] sm:$0xff]  ;;  %v225_v11 = vld [vmem:[#allocation4 + $0x28] sm:$0xff] }
  0x11   :  { %458 = vmatmul.msk.f32.vlgmr.msra.gmra.mxu3 %vm90_vm0, %v80_v8  ;;  %289 = vmatpush.msra.mxu1 %v227_v9  ;;  %v226_v10 = vld [vmem:[#allocation4 + $0x30] sm:$0xff]  ;;  %v224_v13 = vld [vmem:[#allocation4 + $0x20] sm:$0xff]  ;;  %v81_v14 = vld [vmem:[%s775_s0 + $0x60] sm:$0xff] }
  0x12   :  { %497 = vmatpush.msrb.mxu3 %v227_v9  ;;  %v76_v12 = vld [vmem:[%s775_s0 + $0x38] sm:$0xff]  ;;  %v223_v15 = vld [vmem:[#allocation4 + $0x18] sm:$0xff]  ;;  %v82_v17 = vld [vmem:[%s775_s0 + $0x68] sm:$0xff] }
  0x13   :  { %290 = vmatpush.msra.mxu1 %v226_v10  ;;  %v77_v16 = vld [vmem:[%s775_s0 + $0x40] sm:$0xff]  ;;  %v78_v18 = vld [vmem:[%s775_s0 + $0x48] sm:$0xff]  ;;  %v83_v19 = vld [vmem:[%s775_s0 + $0x70] sm:$0xff] }
  0x14   :  { %498 = vmatpush.msrb.mxu3 %v226_v10  ;;  %v79_v20 = vld [vmem:[%s775_s0 + $0x50] sm:$0xff]  ;;  %v84_v21 = vld [vmem:[%s775_s0 + $0x78] sm:$0xff]  ;;  %v220_v24 = vld [vmem:[#allocation4] sm:$0xff] }
  0x15   :  { %291 = vmatpush.msra.mxu1 %v225_v11  ;;  %v222_v22 = vld [vmem:[#allocation4 + $0x10] sm:$0xff]  ;;  %v221_v23 = vld [vmem:[#allocation4 + $0x8] sm:$0xff]  ;;  %v712_v25 = vld [vmem:[%s777_s2] ss:$0 sm:$0xff] }
  0x16   :  { %499 = vmatpush.msrb.mxu3 %v225_v11 }
  0x17   :  { %448 = vmatmul.msk.f32.gmra.mxu0 %vm90_vm0, %v70_v2  ;;  %292 = vmatpush.msra.mxu1 %v224_v13 }
  0x18   :  { %500 = vmatpush.msrb.mxu3 %v224_v13 }
  0x19   :  { %459 = vmatmul.msk.f32.gmra.mxu3 %vm90_vm0, %v81_v14  ;;  %293 = vmatpush.msra.mxu1 %v223_v15 }
  0x1a   :  { %501 = vmatpush.msrb.mxu3 %v223_v15 }
  0x1b   :  { %294 = vmatpush.msra.mxu1 %v222_v22 }
  0x1c   :  { %502 = vmatpush.msrb.mxu3 %v222_v22  ;;  %v513_v22 = vld [vmem:[%s779_s4] ss:$0 sm:$0xff] }
  0x1d   :  { %295 = vmatpush.msra.mxu1 %v221_v23 }
  0x1e   :  { %503 = vmatpush.msrb.mxu3 %v221_v23 }
  0x1f   :  { %449 = vmatmul.msk.f32.gmra.mxu0 %vm90_vm0, %v71_v3  ;;  %296 = vmatpush.msra.mxu1 %v220_v24 }
  0x20   :  { %504 = vmatpush.msrb.mxu3 %v220_v24 }
  0x21   :  { %460 = vmatmul.msk.f32.gmra.mxu3 %vm90_vm0, %v82_v17 }
  0x27   :  { %450 = vmatmul.msk.f32.gmra.mxu0 %vm90_vm0, %v72_v4 }
  0x29   :  { %461 = vmatmul.msk.f32.gmra.mxu3 %vm90_vm0, %v83_v19 }
  0x2f   :  { %451 = vmatmul.msk.f32.gmra.mxu0 %vm90_vm0, %v73_v5 }
  0x31   :  { %462 = vmatmul.msk.f32.gmra.mxu3 %vm90_vm0, %v84_v21 }
  0x37   :  { %452 = vmatmul.msk.f32.gmra.mxu0 %vm90_vm0, %v74_v6 }
  0x3f   :  { %453 = vmatmul.msk.f32.gmra.mxu0 %vm90_vm0, %v75_v7 }
  0x47   :  { %454 = vmatmul.msk.f32.gmra.mxu0 %vm90_vm0, %v76_v12 }
  0x4f   :  { %455 = vmatmul.msk.f32.gmra.mxu0 %vm90_vm0, %v77_v16 }
  0x57   :  { %456 = vmatmul.msk.f32.gmra.mxu0 %vm90_vm0, %v78_v18 }
  0x5f   :  { %457 = vmatmul.msk.f32.gmra.mxu0 %vm90_vm0, %v79_v20 }
  0x8c   :  { %v156_v26 = vpop.f32.mrf.mxu0 }
  0x8d   :  { %v157_v27 = vadd.f32 %v712_v25, %v156_v26 }
  0x8f   :  { %v204_v28 = vmax.f32 %v157_v27, 0.0 }
  0x91   :  { %463 = vmatmul.msk.f32.vlgmr.msra.gmra.mxu1 %vm232_vm1, %v204_v28 }
  0x94   :  { %v159_v29 = vpop.f32.mrf.mxu0  ;;  %v189_v55 = vpop.f32.mrf.mxu3 }
  0x95   :  { %v160_v30 = vadd.f32 %v712_v25, %v159_v29  ;;  %v190_v61 = vadd.f32 %v712_v25, %v189_v55 }
  0x97   :  { %v205_v31 = vmax.f32 %v160_v30, 0.0  ;;  %v215_v62 = vmax.f32 %v190_v61, 0.0  ;;  %v362_v61 = vld [vmem:[#allocation6] sm:$0xff] }
  0x99   :  { %464 = vmatmul.msk.f32.gmra.mxu1 %vm232_vm1, %v205_v31 }
  0x9c   :  { %v162_v32 = vpop.f32.mrf.mxu0  ;;  %v192_v60 = vpop.f32.mrf.mxu3 }
  0x9d   :  { %v163_v33 = vadd.f32 %v712_v25, %v162_v32  ;;  %v193_v63 = vadd.f32 %v712_v25, %v192_v60 }
  0x9f   :  { %v206_v34 = vmax.f32 %v163_v33, 0.0  ;;  %v216_v1 = vmax.f32 %v193_v63, 0.0 }
  0xa1   :  { %465 = vmatmul.msk.f32.gmra.mxu1 %vm232_vm1, %v206_v34 }
  0xa4   :  { %v165_v35 = vpop.f32.mrf.mxu0  ;;  %v195_v0 = vpop.f32.mrf.mxu3 }
  0xa5   :  { %v166_v36 = vadd.f32 %v712_v25, %v165_v35  ;;  %v196_v2 = vadd.f32 %v712_v25, %v195_v0 }
  0xa7   :  { %v207_v37 = vmax.f32 %v166_v36, 0.0  ;;  %v217_v4 = vmax.f32 %v196_v2, 0.0 }
  0xa9   :  { %466 = vmatmul.msk.f32.gmra.mxu1 %vm232_vm1, %v207_v37 }
  0xac   :  { %v168_v38 = vpop.f32.mrf.mxu0  ;;  %v198_v3 = vpop.f32.mrf.mxu3 }
  0xad   :  { %v169_v39 = vadd.f32 %v712_v25, %v168_v38  ;;  %v199_v5 = vadd.f32 %v712_v25, %v198_v3 }
  0xaf   :  { %v208_v40 = vmax.f32 %v169_v39, 0.0  ;;  %v218_v6 = vmax.f32 %v199_v5, 0.0 }
  0xb1   :  { %467 = vmatmul.msk.f32.gmra.mxu1 %vm232_vm1, %v208_v40 }
  0xb4   :  { %v171_v41 = vpop.f32.mrf.mxu0  ;;  %v201_v7 = vpop.f32.mrf.mxu3 }
  0xb5   :  { %v172_v42 = vadd.f32 %v712_v25, %v171_v41  ;;  %v202_v8 = vadd.f32 %v712_v25, %v201_v7 }
  0xb7   :  { %v209_v43 = vmax.f32 %v172_v42, 0.0  ;;  %v219_v9 = vmax.f32 %v202_v8, 0.0 }
  0xb9   :  { %468 = vmatmul.msk.f32.gmra.mxu1 %vm232_vm1, %v209_v43 }
  0xbc   :  { %v174_v44 = vpop.f32.mrf.mxu0 }
  0xbd   :  { %v175_v45 = vadd.f32 %v712_v25, %v174_v44 }
  0xbf   :  { %v210_v46 = vmax.f32 %v175_v45, 0.0 }
  0xc1   :  { %469 = vmatmul.msk.f32.gmra.mxu1 %vm232_vm1, %v210_v46  ;;  %v363_v46 = vld [vmem:[%s781_s6] sm:$0xff] }
  0xc4   :  { %v177_v47 = vpop.f32.mrf.mxu0 }
  0xc5   :  { %v178_v48 = vadd.f32 %v712_v25, %v177_v47  ;;  %v595_v47 = vmov 0  }
  0xc6   :  { %511 = vset.pattern.permute.xlu0 %v595_v47 }
  0xc7   :  { %v211_v49 = vmax.f32 %v178_v48, 0.0  ;;  %366 = vperm.xlu0 %511, %v363_v46  }
  0xc9   :  { %470 = vmatmul.msk.f32.gmra.mxu1 %vm232_vm1, %v211_v49 }
  0xcc   :  { %v180_v50 = vpop.f32.mrf.mxu0 }
  0xcd   :  { %v181_v51 = vadd.f32 %v712_v25, %v180_v50 }
  0xcf   :  { %v212_v52 = vmax.f32 %v181_v51, 0.0 }
  0xd1   :  { %471 = vmatmul.msk.f32.gmra.mxu1 %vm232_vm1, %v212_v52 }
  0xd4   :  { %v183_v53 = vpop.f32.mrf.mxu0 }
  0xd5   :  { %v184_v54 = vadd.f32 %v712_v25, %v183_v53 }
  0xd7   :  { %v213_v56 = vmax.f32 %v184_v54, 0.0 }
  0xd9   :  { %472 = vmatmul.msk.f32.gmra.mxu1 %vm232_vm1, %v213_v56 }
  0xdc   :  { %v186_v57 = vpop.f32.mrf.mxu0 }
  0xdd   :  { %v187_v58 = vadd.f32 %v712_v25, %v186_v57 }
  0xdf   :  { %v214_v59 = vmax.f32 %v187_v58, 0.0 }
  0xe1   :  { %473 = vmatmul.msk.f32.vlgmr.msrb.gmra.mxu3 %vm232_vm1, %v214_v59 }
  0xe9   :  { %474 = vmatmul.msk.f32.gmra.mxu3 %vm232_vm1, %v215_v62 }
  0xf1   :  { %475 = vmatmul.msk.f32.gmra.mxu3 %vm232_vm1, %v216_v1 }
  0xf9   :  { %476 = vmatmul.msk.f32.gmra.mxu3 %vm232_vm1, %v217_v4 }
 0x101   :  { %477 = vmatmul.msk.f32.gmra.mxu3 %vm232_vm1, %v218_v6 }
 0x109   :  { %478 = vmatmul.msk.f32.gmra.mxu3 %vm232_vm1, %v219_v9 }
 0x10e   :  { %v746_v10 = vpop.f32.mrf.mxu1 }
 0x10f   :  { %v299_v58 = vadd.f32 %v513_v22, %v746_v10 }
 0x111   :  { %v346_v60 = vmax.f32 %v299_v58, 0.0 }
 0x116   :  { %v301_v11 = vpop.f32.mrf.mxu1 }
 0x117   :  { %v302_v56 = vadd.f32 %v513_v22, %v301_v11 }
 0x119   :  { %v347_v59 = vmax.f32 %v302_v56, 0.0 }
 0x11e   :  { %v304_v12 = vpop.f32.mrf.mxu1 }
 0x11f   :  { %v305_v54 = vadd.f32 %v513_v22, %v304_v12 }
 0x121   :  { %v348_v57 = vmax.f32 %v305_v54, 0.0 }
 0x126   :  { %v307_v13 = vpop.f32.mrf.mxu1 }
 0x127   :  { %v308_v52 = vadd.f32 %v513_v22, %v307_v13 }
 0x129   :  { %v349_v55 = vmax.f32 %v308_v52, 0.0 }
 0x12e   :  { %v310_v16 = vpop.f32.mrf.mxu1 }
 0x12f   :  { %v311_v50 = vadd.f32 %v513_v22, %v310_v16 }
 0x131   :  { %v350_v53 = vmax.f32 %v311_v50, 0.0 }
 0x136   :  { %v313_v18 = vpop.f32.mrf.mxu1 }
 0x137   :  { %v314_v48 = vadd.f32 %v513_v22, %v313_v18 }
 0x139   :  { %v351_v51 = vmax.f32 %v314_v48, 0.0  ;;  %v367_v62 = vpop.permute.xlu0 %366 }
 0x13e   :  { %v316_v20 = vpop.f32.mrf.mxu1 }
 0x13f   :  { %v317_v44 = vadd.f32 %v513_v22, %v316_v20 }
 0x141   :  { %v352_v49 = vmax.f32 %v317_v44, 0.0 }
 0x146   :  { %v319_v23 = vpop.f32.mrf.mxu1 }
 0x147   :  { %v320_v42 = vadd.f32 %v513_v22, %v319_v23 }
 0x149   :  { %v353_v45 = vmax.f32 %v320_v42, 0.0 }
 0x14e   :  { %v322_v30 = vpop.f32.mrf.mxu1 }
 0x14f   :  { %v323_v40 = vadd.f32 %v513_v22, %v322_v30 }
 0x151   :  { %v354_v43 = vmax.f32 %v323_v40, 0.0 }
 0x156   :  { %v325_v37 = vpop.f32.mrf.mxu1 }
 0x157   :  { %v326_v38 = vadd.f32 %v513_v22, %v325_v37 }
 0x159   :  { %v355_v41 = vmax.f32 %v326_v38, 0.0 }
 0x164   :  { %v328_v14 = vpop.f32.mrf.mxu3 }
 0x165   :  { %v329_v35 = vadd.f32 %v513_v22, %v328_v14 }
 0x167   :  { %v356_v39 = vmax.f32 %v329_v35, 0.0 }
 0x16c   :  { %v331_v15 = vpop.f32.mrf.mxu3 }
 0x16d   :  { %v332_v33 = vadd.f32 %v513_v22, %v331_v15 }
 0x16f   :  { %v357_v36 = vmax.f32 %v332_v33, 0.0 }
 0x174   :  { %v334_v17 = vpop.f32.mrf.mxu3 }
 0x175   :  { %v335_v31 = vadd.f32 %v513_v22, %v334_v17 }
 0x177   :  { %v358_v34 = vmax.f32 %v335_v31, 0.0 }
 0x17c   :  { %v337_v19 = vpop.f32.mrf.mxu3 }
 0x17d   :  { %v338_v28 = vadd.f32 %v513_v22, %v337_v19 }
 0x17f   :  { %v359_v32 = vmax.f32 %v338_v28, 0.0 }
 0x184   :  { %v340_v21 = vpop.f32.mrf.mxu3 }
 0x185   :  { %v341_v26 = vadd.f32 %v513_v22, %v340_v21 }
 0x187   :  { %v360_v29 = vmax.f32 %v341_v26, 0.0 }
 0x18c   :  { %v343_v24 = vpop.f32.mrf.mxu3 }
 0x18d   :  { %v344_v25 = vadd.f32 %v513_v22, %v343_v24 }
 0x18f   :  { %v361_v27 = vmax.f32 %v344_v25, 0.0 }
 0x191   :  { %479 = vmatpush.xpose.msk.msra.mxu2 %vm232_vm1, %v361_v27 }
 0x195   :  { %480 = vmatpush.xpose.msk.msra.mxu2 %vm232_vm1, %v360_v29 }
 0x199   :  { %481 = vmatpush.xpose.msk.msra.mxu2 %vm232_vm1, %v359_v32 }
 0x19d   :  { %482 = vmatpush.xpose.msk.msra.mxu2 %vm232_vm1, %v358_v34 }
 0x1a1   :  { %483 = vmatpush.xpose.msk.msra.mxu2 %vm232_vm1, %v357_v36 }
 0x1a5   :  { %484 = vmatpush.xpose.msk.msra.mxu2 %vm232_vm1, %v356_v39 }
 0x1a9   :  { %485 = vmatpush.xpose.msk.msra.mxu2 %vm232_vm1, %v355_v41 }
 0x1ad   :  { %486 = vmatpush.xpose.msk.msra.mxu2 %vm232_vm1, %v354_v43 }
 0x1b1   :  { %487 = vmatpush.xpose.msk.msra.mxu2 %vm232_vm1, %v353_v45 }
 0x1b5   :  { %488 = vmatpush.xpose.msk.msra.mxu2 %vm232_vm1, %v352_v49 }
 0x1b9   :  { %489 = vmatpush.xpose.msk.msra.mxu2 %vm232_vm1, %v351_v51 }
 0x1bd   :  { %490 = vmatpush.xpose.msk.msra.mxu2 %vm232_vm1, %v350_v53 }
 0x1c1   :  { %491 = vmatpush.xpose.msk.msra.mxu2 %vm232_vm1, %v349_v55 }
 0x1c5   :  { %492 = vmatpush.xpose.msk.msra.mxu2 %vm232_vm1, %v348_v57 }
 0x1c9   :  { %493 = vmatpush.xpose.msk.msra.mxu2 %vm232_vm1, %v347_v59 }
 0x1cd   :  { %494 = vmatpush.xpose.msk.msra.mxu2 %vm232_vm1, %v346_v60 }
 0x1d0   :  { %495 = vmatmul.msk.f32.vlgmr.msra.gmra.mxu2 %vm232_vm1, %v362_v61 }
 0x253   :  { %v437_v63 = vpop.f32.mrf.mxu2 }
 0x254   :  { %v438_v0 = vadd.f32 %v437_v63, %v367_v62 }
 0x256   :  { %440 = vst [vmem:[%s782_s7] sm:$0xff] %v438_v0 }
 0x257   :  { %445 = vsyncpa [#allocation3], 1 }
 0x258   :  { %446 = vsyncpa [#allocation5], 1 }

</bundles_post_ra>
